<compile_context>
chip_gen: v7x
topology: tpu7x:2x2x1
jax: 0.10.0
libtpu: 0.0.40
codegen_flags: <defaults>
</compile_context>

<pallas_src>
import functools

import numpy as np
import jax
import jax.numpy as jnp
from jax.experimental import pallas as pl
from jax.experimental.pallas import tpu as pltpu


_SUBLANE = 8
_LANE = 128
_MAX_TILE_B = 512
_X_TILE_BUDGET = 8 * 1024 * 1024   # per-buffer VMEM budget for the streamed x tile


def _round_up(n, m):
    return ((n + m - 1) // m) * m


def _pick_tile_b(B, D, bytes_per_elem=4):
    """Batch-tile heuristic (generation & D aware).

    - One grid step whenever the (sublane-rounded) batch fits the VMEM budget: the grid
      is a *sequential* loop on v5e/v6e and per-step pipeline overhead dominates for
      small DQN batches.
    - Otherwise a 128-row-aligned streaming tile (fills the MXU M dim, keeps the action
      row and transposed-Q stores lane-dense), capped by a D-aware budget because the x
      tile is double-buffered and v7x has only 64 MiB of VMEM.
    """
    cap = max(_SUBLANE, _X_TILE_BUDGET // (2 * D * bytes_per_elem))
    cap = min(cap, _MAX_TILE_B)
    b_full = _round_up(max(B, 1), _SUBLANE)
    if b_full <= cap:
        return b_full                          # single grid step covers the whole batch
    if cap >= _LANE:
        return (cap // _LANE) * _LANE          # lane-aligned streaming tile
    return (cap // _SUBLANE) * _SUBLANE        # huge-D fallback


def _vmem_limit_bytes(tile_b, D, H, A_pad):
    f = 4  # f32
    need = (
        2 * tile_b * D * f                          # x tile, double-buffered
        + 2 * (D * H + H + H * A_pad + A_pad) * f   # resident weights/biases (2 bufs)
        + 2 * 2 * A_pad * tile_b * f                # output block, double-buffered (upper bound)
        + (tile_b * H + 2 * tile_b * A_pad) * f     # h, q, q.T temporaries
    )
    need = 2 * need + (1 << 20)                     # headroom for spills / internal scratch
    return int(min(max(need, 32 * 1024 * 1024), 60 * 1024 * 1024))


def _pad_head(w2, b2):
    """Pad the action dim to a full 128-lane block: zero weights, -1e30 bias so padded
    actions can never win the argmax (Q stays f32, so -1e30 is safe)."""
    A = w2.shape[1]
    A_pad = _round_up(A, _LANE)
    if A_pad == A:
        return w2, b2, A_pad
    w2p = jnp.pad(w2, ((0, 0), (0, A_pad - A)))
    b2p = jnp.pad(b2, ((0, 0), (0, A_pad - A)), constant_values=-1e30)
    return w2p, b2p, A_pad


# ---------------------------------------------------------------------------
# shared MLP body: Linear -> ReLU -> Linear (all f32, MXU accumulates f32)
# ---------------------------------------------------------------------------
def _mlp_q(x_ref, w1_ref, b1_ref, w2_ref, b2_ref):
    x = x_ref[...]                                                        # (tb, D) f32
    h = jnp.dot(x, w1_ref[...], preferred_element_type=jnp.float32) + b1_ref[...]
    h = jnp.maximum(h, 0.0)                                               # ReLU
    q = jnp.dot(h, w2_ref[...], preferred_element_type=jnp.float32) + b2_ref[...]
    return q                                                              # (tb, A_pad) f32


# ---------------------------------------------------------------------------
# forward: Q-values, emitted transposed (actions on sublanes, batch on lanes)
# ---------------------------------------------------------------------------
def dqn_forward_kernel(x_ref, w1_ref, b1_ref, w2_ref, b2_ref, qt_ref, *, n_actions):
    q = _mlp_q(x_ref, w1_ref, b1_ref, w2_ref, b2_ref)                    # (tb, A_pad)
    # Lane-dense output: store Q transposed; keep only the real action rows.
    qt_ref[...] = q.T[:n_actions].astype(qt_ref.dtype)                   # (A, tb)


def dqn_forward(x, w1, b1, w2, b2, *, tile_b=None):
    """Q-values (B, A) f32 == relu(x @ w1 + b1) @ w2 + b2."""
    B, D = x.shape
    H = w1.shape[1]
    A = w2.shape[1]
    w2p, b2p, A_pad = _pad_head(w2, b2)
    tile_b = _pick_tile_b(B, D) if tile_b is None else tile_b
    num_tiles = pl.cdiv(B, tile_b)
    Bp = num_tiles * tile_b

    qt = pl.pallas_call(
        functools.partial(dqn_forward_kernel, n_actions=A),
        out_shape=jax.ShapeDtypeStruct((A, Bp), jnp.float32),
        grid=(num_tiles,),
        in_specs=[
            pl.BlockSpec((tile_b, D), lambda i: (i, 0)),     # x tile (streamed; last tile masked)
            pl.BlockSpec((D, H), lambda i: (0, 0)),          # w1 (VMEM-resident)
            pl.BlockSpec((1, H), lambda i: (0, 0)),          # b1
            pl.BlockSpec((H, A_pad), lambda i: (0, 0)),      # w2 (lane-padded, resident)
            pl.BlockSpec((1, A_pad), lambda i: (0, 0)),      # b2 (lane-padded)
        ],
        out_specs=pl.BlockSpec((A, tile_b), lambda i: (0, i)),  # lane-dense transposed Q
        compiler_params=pltpu.CompilerParams(
            dimension_semantics=("parallel",),
            vmem_limit_bytes=_vmem_limit_bytes(tile_b, D, H, A_pad),
        ),
    )(x, w1, b1, w2p, b2p)
    return qt[:, :B].T                                       # back to (B, A)


# ---------------------------------------------------------------------------
# get_action: forward + argmax(dim=1), Q never materialized in HBM
# ---------------------------------------------------------------------------
def dqn_action_kernel(x_ref, w1_ref, b1_ref, w2_ref, b2_ref, act_ref, *, a_sub):
    q = _mlp_q(x_ref, w1_ref, b1_ref, w2_ref, b2_ref)                    # (tb, A_pad) f32
    # torch.argmax(dim=1) with first-maximal-index semantics, lane-dense:
    # actions on sublanes, slice to the real round_up(A, 8) rows, reduce over sublanes.
    qt = q.T[:a_sub]                                                     # (a_sub, tb)
    max_q = jnp.max(qt, axis=0, keepdims=True)                           # (1, tb)
    idx = jax.lax.broadcasted_iota(jnp.int32, qt.shape, 0)               # action index per row
    masked = jnp.where(qt == max_q, idx, a_sub)                          # non-max -> sentinel
    act_ref[...] = jnp.min(masked, axis=0, keepdims=True).astype(jnp.int32)  # (1, tb)


def dqn_get_action(x, w1, b1, w2, b2, *, tile_b=None):
    """Actions (B,) int32 == argmax(q, axis=1)."""
    B, D = x.shape
    H = w1.shape[1]
    A = w2.shape[1]
    a_sub = _round_up(A, _SUBLANE)
    w2p, b2p, A_pad = _pad_head(w2, b2)
    tile_b = _pick_tile_b(B, D) if tile_b is None else tile_b
    num_tiles = pl.cdiv(B, tile_b)
    Bp = num_tiles * tile_b

    act = pl.pallas_call(
        functools.partial(dqn_action_kernel, a_sub=a_sub),
        out_shape=jax.ShapeDtypeStruct((1, Bp), jnp.int32),
        grid=(num_tiles,),
        in_specs=[
            pl.BlockSpec((tile_b, D), lambda i: (i, 0)),     # x tile (streamed; last tile masked)
            pl.BlockSpec((D, H), lambda i: (0, 0)),          # w1 (VMEM-resident)
            pl.BlockSpec((1, H), lambda i: (0, 0)),          # b1
            pl.BlockSpec((H, A_pad), lambda i: (0, 0)),      # w2 (lane-padded, resident)
            pl.BlockSpec((1, A_pad), lambda i: (0, 0)),      # b2 (lane-padded)
        ],
        out_specs=pl.BlockSpec((1, tile_b), lambda i: (0, i)),  # lane-dense action row
        compiler_params=pltpu.CompilerParams(
            dimension_semantics=("parallel",),
            vmem_limit_bytes=_vmem_limit_bytes(tile_b, D, H, A_pad),
        ),
    )(x, w1, b1, w2p, b2p)
    return act[0, :B]


def get_action(observation, params, task_label=None):
    """Mirror of DQNModel.get_action: argmax(q, dim=1) -> int32 numpy (.cpu().int().numpy())."""
    del task_label  # ignored, as in the base class signature
    w1, b1, w2, b2 = params
    act = dqn_get_action(observation, w1, b1, w2, b2)
    return np.asarray(jax.device_get(act), dtype=np.int32)


if __name__ == "__main__":
    B, D, H, A = 32, 32, 64, 8   # batch, obs dim, hidden, n_actions

    key = jax.random.PRNGKey(0)
    kx, k1, k2, k3, k4 = jax.random.split(key, 5)

    x = jax.random.normal(kx, (B, D), dtype=jnp.float32)
    w1 = jax.random.normal(k1, (D, H), dtype=jnp.float32) * 0.1
    b1 = jax.random.normal(k2, (1, H), dtype=jnp.float32) * 0.1
    w2 = jax.random.normal(k3, (H, A), dtype=jnp.float32) * 0.1
    b2 = jax.random.normal(k4, (1, A), dtype=jnp.float32) * 0.1

    # --- forward (Q-values), f32 throughout ---
    q = jax.block_until_ready(dqn_forward(x, w1, b1, w2, b2))
    q_ref = jnp.maximum(x @ w1 + b1, 0.0) @ w2 + b2
    np.testing.assert_allclose(np.asarray(q), np.asarray(q_ref), rtol=1e-5, atol=1e-5)

    # --- fused forward + argmax (torch-style argmax over dim=1) ---
    act = jax.block_until_ready(dqn_get_action(x, w1, b1, w2, b2))
    act_ref = jnp.argmax(q_ref, axis=1).astype(jnp.int32)
    np.testing.assert_array_equal(np.asarray(act), np.asarray(act_ref))

    # --- ragged batch: exercises the partial-tile masked-read path (no jnp.pad copy) ---
    q13 = jax.block_until_ready(dqn_forward(x[:13], w1, b1, w2, b2))
    np.testing.assert_allclose(np.asarray(q13), np.asarray(q_ref[:13]), rtol=1e-5, atol=1e-5)
    act13 = jax.block_until_ready(dqn_get_action(x[:13], w1, b1, w2, b2))
    np.testing.assert_array_equal(np.asarray(act13), np.asarray(act_ref[:13]))

    # --- multi-tile streaming path (grid > 1, 128-lane tiles) ---
    B2 = 384
    x2 = jax.random.normal(kx, (B2, D), dtype=jnp.float32)
    q2_ref = jnp.maximum(x2 @ w1 + b1, 0.0) @ w2 + b2
    q2 = jax.block_until_ready(dqn_forward(x2, w1, b1, w2, b2, tile_b=128))
    np.testing.assert_allclose(np.asarray(q2), np.asarray(q2_ref), rtol=1e-5, atol=1e-5)
    act2 = jax.block_until_ready(dqn_get_action(x2, w1, b1, w2, b2, tile_b=128))
    np.testing.assert_array_equal(np.asarray(act2),
                                  np.asarray(jnp.argmax(q2, axis=1).astype(jnp.int32)))

    # --- exercise the get_action wrapper (numpy int32, like .cpu().int().numpy()) ---
    actions_np = get_action(x, (w1, b1, w2, b2))
    assert actions_np.dtype == np.int32 and actions_np.shape == (B,)

    print("KERNEL_OK")
</pallas_src>

<mosaic_0001>
module attributes {stable_mosaic.version = 11 : i64} {
  func.func @dqn_forward_kernel(%arg0: i32, %arg1: memref<32x32xf32, #tpu.memory_space<vmem>>, %arg2: memref<32x64xf32, #tpu.memory_space<vmem>>, %arg3: memref<1x64xf32, #tpu.memory_space<vmem>>, %arg4: memref<64x128xf32, #tpu.memory_space<vmem>>, %arg5: memref<1x128xf32, #tpu.memory_space<vmem>>, %arg6: memref<8x32xf32, #tpu.memory_space<vmem>>) attributes {dimension_semantics = [#tpu.dimension_semantics<parallel>], iteration_bounds = array<i64: 1>, scalar_prefetch = 0 : i64, scratch_operands = 0 : i64, tpu.core_type = #tpu.core_type<tc>, window_params = [{transform_indices = @transform_0, window_bounds = array<i64: 32, 32>}, {pipeline_mode = #tpu.pipeline_mode<synchronous>, transform_indices = @transform_1, window_bounds = array<i64: 32, 64>}, {pipeline_mode = #tpu.pipeline_mode<synchronous>, transform_indices = @transform_2, window_bounds = array<i64: 1, 64>}, {pipeline_mode = #tpu.pipeline_mode<synchronous>, transform_indices = @transform_3, window_bounds = array<i64: 64, 128>}, {pipeline_mode = #tpu.pipeline_mode<synchronous>, transform_indices = @transform_4, window_bounds = array<i64: 1, 128>}, {transform_indices = @transform_5, window_bounds = array<i64: 8, 32>}]} {
    %c0 = arith.constant 0 : index
    %c0_0 = arith.constant 0 : index
    %0 = vector.load %arg1[%c0, %c0_0] : memref<32x32xf32, #tpu.memory_space<vmem>>, vector<32x32xf32>
    %c0_1 = arith.constant 0 : index
    %c0_2 = arith.constant 0 : index
    %1 = vector.load %arg2[%c0_1, %c0_2] : memref<32x64xf32, #tpu.memory_space<vmem>>, vector<32x64xf32>
    %cst = arith.constant dense<0.000000e+00> : vector<32x64xf32>
    %2 = tpu.matmul %0, %1, %cst {dimension_numbers = #tpu.dot_dimension_numbers<[1], [0], [0], [1], [0, 0, 1, 1], [], []>} : vector<32x32xf32>, vector<32x64xf32>, vector<32x64xf32> -> vector<32x64xf32>
    %c0_3 = arith.constant 0 : index
    %c0_4 = arith.constant 0 : index
    %3 = vector.load %arg3[%c0_3, %c0_4] : memref<1x64xf32, #tpu.memory_space<vmem>>, vector<1x64xf32>
    %4 = vector.broadcast %3 : vector<1x64xf32> to vector<32x64xf32>
    %5 = arith.addf %2, %4 : vector<32x64xf32>
    %cst_5 = arith.constant 0.000000e+00 : f32
    %6 = vector.broadcast %cst_5 : f32 to vector<32x64xf32>
    %7 = arith.maximumf %5, %6 : vector<32x64xf32>
    %c0_6 = arith.constant 0 : index
    %c0_7 = arith.constant 0 : index
    %8 = vector.load %arg4[%c0_6, %c0_7] : memref<64x128xf32, #tpu.memory_space<vmem>>, vector<64x128xf32>
    %cst_8 = arith.constant dense<0.000000e+00> : vector<32x128xf32>
    %9 = tpu.matmul %7, %8, %cst_8 {dimension_numbers = #tpu.dot_dimension_numbers<[1], [0], [0], [1], [0, 0, 1, 1], [], []>} : vector<32x64xf32>, vector<64x128xf32>, vector<32x128xf32> -> vector<32x128xf32>
    %c0_9 = arith.constant 0 : index
    %c0_10 = arith.constant 0 : index
    %10 = vector.load %arg5[%c0_9, %c0_10] : memref<1x128xf32, #tpu.memory_space<vmem>>, vector<1x128xf32>
    %11 = vector.broadcast %10 : vector<1x128xf32> to vector<32x128xf32>
    %12 = arith.addf %9, %11 : vector<32x128xf32>
    %13 = tpu.transpose %12, [1, 0] : vector<32x128xf32> -> vector<128x32xf32>
    %14 = vector.extract_strided_slice %13 {offsets = [0, 0], sizes = [8, 32], strides = [1, 1]} : vector<128x32xf32> to vector<8x32xf32>
    %c0_11 = arith.constant 0 : index
    %c0_12 = arith.constant 0 : index
    %15 = vector.load %arg6[%c0_11, %c0_12] : memref<8x32xf32, #tpu.memory_space<vmem>>, vector<8x32xf32>
    tpu.vector_store %arg6[%c0_11, %c0_12], %14 {strides = array<i32>} : memref<8x32xf32, #tpu.memory_space<vmem>>, vector<8x32xf32>,
    return
  }
  func.func @transform_0(%arg0: i32) -> (i32, i32) {
    %c0_i32 = arith.constant 0 : i32
    %c0_i32_0 = arith.constant 0 : i32
    return %arg0, %c0_i32 : i32, i32
  }
  func.func @transform_1(%arg0: i32) -> (i32, i32) {
    %c0_i32 = arith.constant 0 : i32
    %c0_i32_0 = arith.constant 0 : i32
    %c0_i32_1 = arith.constant 0 : i32
    return %c0_i32, %c0_i32_0 : i32, i32
  }
  func.func @transform_2(%arg0: i32) -> (i32, i32) {
    %c0_i32 = arith.constant 0 : i32
    %c0_i32_0 = arith.constant 0 : i32
    %c0_i32_1 = arith.constant 0 : i32
    return %c0_i32, %c0_i32_0 : i32, i32
  }
  func.func @transform_3(%arg0: i32) -> (i32, i32) {
    %c0_i32 = arith.constant 0 : i32
    %c0_i32_0 = arith.constant 0 : i32
    %c0_i32_1 = arith.constant 0 : i32
    return %c0_i32, %c0_i32_0 : i32, i32
  }
  func.func @transform_4(%arg0: i32) -> (i32, i32) {
    %c0_i32 = arith.constant 0 : i32
    %c0_i32_0 = arith.constant 0 : i32
    %c0_i32_1 = arith.constant 0 : i32
    return %c0_i32, %c0_i32_0 : i32, i32
  }
  func.func @transform_5(%arg0: i32) -> (i32, i32) {
    %c0_i32 = arith.constant 0 : i32
    %c0_i32_0 = arith.constant 0 : i32
    return %c0_i32, %arg0 : i32, i32
  }
}

</mosaic_0001>

<bundles_post_ra>
// kernel: tpu_custom_call.1
= control target key start
LH: loop header
LB: loop body
LE: loop exit
PB: predicated region body
PF: predicated region fallthrough
CT: control target
= control target key end

     0   :  { %10 = vsyncpa [#allocation3], 0  ;;  %s643_s0 = inlined_call_operand.hbm [shape: f32[32,32], index: 0, kind: input, shape index: {}]   ;;  %s644_s1 = inlined_call_operand.hbm [shape: f32[32,64], index: 1, kind: input, shape index: {}]   ;;  %s645_s2 = inlined_call_operand.vmem [shape: f32[1,64], index: 2, kind: input, shape index: {}]   ;;  %s646_s3 = inlined_call_operand.hbm [shape: f32[64,128], index: 3, kind: input, shape index: {}]   ;;  %s647_s4 = inlined_call_operand.vmem [shape: f32[1,128], index: 4, kind: input, shape index: {}]   ;;  %s648_s5 = inlined_call_operand.hbm [shape: f32[8,32], index: 5, kind: output, shape index: {}]  }
   0x1   :  { %11 = vsyncpa [#allocation6], 0 }
   0x2   :  { %12 = vsyncpa [#allocation4], 0  ;;  %s532_s18 = smov [#allocation5]   ;;  %s533_s20 = smov [#allocation2]  }
   0x3   :  { %s30_s19 = sshll.u32 %s532_s18, 4  ;;  %s18_s21 = sshll.u32 %s533_s20, 4  ;;  %s31_s19 = int_to_ptr.vmem [resolvable:$true] %s30_s19  ;;  %s568_s21 = int_to_ptr.vmem [resolvable:$true] %s18_s21 }
   0x4   :  { %s438_s24 = scalar_lea.hbm %s644_s1, 512 }
   0x5   :  { %p439_p0 = scmp.ne.s32.totalorder %s644_s1, %s438_s24  ;;  %p442_p1 = scmp.lt.u32.totalorder %s438_s24, %s644_s1 }
   0x7   :  { %p444_p2 = pnand %p442_p1, %p439_p0 }
   0x9   :  { %447 = shalt.err (!%p444_p2)
}
   0xa   :  { %s448_s29 = scalar_lea.vmem %s31_s19, 512  ;;  %p453_p4 = scmp.lt.s32.totalorder %s31_s19, %s31_s19 }
   0xb   :  { %p449_p3 = scmp.ne.s32.totalorder %s31_s19, %s448_s29  ;;  %p454_p5 = scmp.lt.s32.totalorder %s448_s29, %s448_s29 }
   0xd   :  { %p455_p6 = por %p454_p5, %p453_p4 }
   0xf   :  { %p456_p7 = pnand %p455_p6, %p449_p3 }
  0x11   :  { %459 = shalt.err (!%p456_p7)
}
  0x12   :  { %s534_s30 = smov 128   ;;  %s535_s6 = smov 8  }
  0x13   :  { %36 = dma.hbm_to_vmem [thread:$0]  %s644_s1, 512, %s31_s19, [#allocation6], %s534_s30, %s534_s30, %s535_s6  }
  0x14   :  { %s460_s11 = scalar_lea.hbm %s643_s0, 512 }
  0x15   :  { %p461_p8 = scmp.ne.s32.totalorder %s643_s0, %s460_s11  ;;  %p464_p9 = scmp.lt.u32.totalorder %s460_s11, %s643_s0 }
  0x17   :  { %p466_p10 = pnand %p464_p9, %p461_p8 }
  0x19   :  { %469 = shalt.err (!%p466_p10)
}
  0x1a   :  { %s470_s16 = scalar_lea.vmem %s568_s21, 512  ;;  %p475_p12 = scmp.lt.s32.totalorder %s568_s21, %s568_s21 }
  0x1b   :  { %p471_p11 = scmp.ne.s32.totalorder %s568_s21, %s470_s16  ;;  %p476_p13 = scmp.lt.s32.totalorder %s470_s16, %s470_s16 }
  0x1d   :  { %p477_p0 = por %p476_p13, %p475_p12 }
  0x1f   :  { %p478_p1 = pnand %p477_p0, %p471_p11 }
  0x21   :  { %481 = shalt.err (!%p478_p1)
}
  0x22   :  { %24 = dma.hbm_to_vmem [thread:$0]  %s643_s0, 512, %s568_s21, [#allocation3], %s534_s30, %s534_s30, %s535_s6  }
  0x23   :  { %s536_s18 = smov [#allocation7]   ;;  %s482_s23 = scalar_lea.hbm %s646_s3, 1024 }
  0x24   :  { %s44_s19 = sshll.u32 %s536_s18, 4  ;;  %p483_p2 = scmp.ne.s32.totalorder %s646_s3, %s482_s23  ;;  %s45_s19 = int_to_ptr.vmem [resolvable:$true] %s44_s19 }
  0x25   :  { %p486_p3 = scmp.lt.u32.totalorder %s482_s23, %s646_s3 }
  0x27   :  { %p488_p4 = pnand %p486_p3, %p483_p2 }
  0x29   :  { %491 = shalt.err (!%p488_p4)
}
  0x2a   :  { %s492_s28 = scalar_lea.vmem %s45_s19, 1024  ;;  %p497_p6 = scmp.lt.s32.totalorder %s45_s19, %s45_s19 }
  0x2b   :  { %p493_p5 = scmp.ne.s32.totalorder %s45_s19, %s492_s28  ;;  %p498_p7 = scmp.lt.s32.totalorder %s492_s28, %s492_s28 }
  0x2d   :  { %p499_p8 = por %p498_p7, %p497_p6 }
  0x2f   :  { %p500_p9 = pnand %p499_p8, %p493_p5 }
  0x31   :  { %503 = shalt.err (!%p500_p9)
}
  0x32   :  { %50 = dma.hbm_to_vmem [thread:$0]  %s646_s3, 1024, %s45_s19, [#allocation6], %s534_s30, %s534_s30, %s535_s6  }
  0x33   :  { %526 = dma.done.wait [#allocation3], 512  }
  0x34   :  { %527 = vsyncadd [#allocation3], 4294966784 }
  0x35   :  { %528 = dma.done.wait [#allocation6], 1536  }
  0x36   :  { %529 = vsyncadd [#allocation6], 4294965760  ;;  %vm77_vm0 = vcmask 261120   ;;  %v66_v0 = vld [vmem:[#allocation5] sm:$0xff]  ;;  %v67_v1 = vld [vmem:[#allocation5 + $0x8] sm:$0xff]  ;;  %vm194_vm1 = vcmask 523264  }
  0x37   :  { %v68_v2 = vld [vmem:[#allocation5 + $0x10] sm:$0xff]  ;;  %v407_v3 = vpack.c.bf16 %v67_v1, %v66_v0  ;;  %v69_v4 = vld [vmem:[#allocation5 + $0x18] sm:$0xff]  ;;  %v62_v5 = vld [vmem:[#allocation2] sm:$0xff] }
  0x38   :  { %v411_v6 = vpack.c.bf16 %v69_v4, %v68_v2  ;;  %379 = vmatprep.mubr.msk.f32.mxu0 %vm77_vm0, %v62_v5  ;;  %v179_v7 = vld [vmem:[#allocation7] sm:$0xff]  ;;  %v180_v8 = vld [vmem:[#allocation7 + $0x8] sm:$0xff]  ;;  %v181_v9 = vld [vmem:[#allocation7 + $0x10] sm:$0xff] }
  0x39   :  { %408 = vmatprep.subr.bf16.mxu0 %v407_v3  ;;  %v182_v10 = vld [vmem:[#allocation7 + $0x18] sm:$0xff]  ;;  %v415_v11 = vpack.c.bf16 %v180_v8, %v179_v7  ;;  %v183_v13 = vld [vmem:[#allocation7 + $0x20] sm:$0xff]  ;;  %v184_v14 = vld [vmem:[#allocation7 + $0x28] sm:$0xff] }
  0x3a   :  { %410 = vmatpush3.bf16.msra.mxu0 %v407_v3  ;;  %v419_v12 = vpack.c.bf16 %v182_v10, %v181_v9  ;;  %v63_v15 = vld [vmem:[#allocation2 + $0x8] sm:$0xff]  ;;  %v423_v16 = vpack.c.bf16 %v184_v14, %v183_v13  ;;  %v64_v17 = vld [vmem:[#allocation2 + $0x10] sm:$0xff]  ;;  %v65_v18 = vld [vmem:[#allocation2 + $0x18] sm:$0xff] }
  0x3b   :  { %412 = vmatprep.subr.bf16.mxu0 %v411_v6  ;;  %416 = vmatprep.subr.bf16.mxu1 %v415_v11  ;;  %v185_v19 = vld [vmem:[#allocation7 + $0x30] sm:$0xff]  ;;  %v186_v20 = vld [vmem:[#allocation7 + $0x38] sm:$0xff]  ;;  %v341_v22 = vld [vmem:[%s645_s2] ss:$0 sm:$0xff]  ;;  %s537_s2 = smov [#allocation8]  }
  0x3c   :  { %418 = vmatpush3.bf16.msra.mxu1 %v415_v11  ;;  %v427_v21 = vpack.c.bf16 %v186_v20, %v185_v19  ;;  %v346_v35 = vld [vmem:[%s647_s4] ss:$0 sm:$0xff]  ;;  %s331_s7 = sshll.u32 %s537_s2, 4  ;;  %s332_s7 = int_to_ptr.vmem [resolvable:$true] %s331_s7 }
  0x3d   :  { %420 = vmatprep.subr.bf16.mxu1 %v419_v12  ;;  %s504_s8 = scalar_lea.vmem %s332_s7, 128  ;;  %p509_p11 = scmp.lt.s32.totalorder %s332_s7, %s332_s7 }
  0x3e   :  { %414 = vmatpush3.bf16.msra.mxu0 %v411_v6  ;;  %p505_p10 = scmp.ne.s32.totalorder %s332_s7, %s504_s8  ;;  %p510_p12 = scmp.lt.s32.totalorder %s504_s8, %s504_s8 }
  0x40   :  { %422 = vmatpush3.bf16.msra.mxu1 %v419_v12  ;;  %p511_p13 = por %p510_p12, %p509_p11 }
  0x41   :  { %380 = vmatmul.mubr.msk.f32.vlgmr.msra.gmra.mrb[0].mxu0 %vm77_vm0, %v63_v15  ;;  %424 = vmatprep.subr.bf16.mxu1 %v423_v16 }
  0x42   :  { %382 = vmatprep.mubr.msk.f32.mxu0 %vm77_vm0, %v64_v17  ;;  %p512_p0 = pnand %p511_p13, %p505_p10 }
  0x44   :  { %426 = vmatpush3.bf16.msra.mxu1 %v423_v16 }
  0x45   :  { %383 = vmatmul.mubr.msk.f32.gmra.mrb[2].mxu0 %vm77_vm0, %v65_v18  ;;  %428 = vmatprep.subr.bf16.mxu1 %v427_v21 }
  0x48   :  { %430 = vmatpush3.bf16.msra.mxu1 %v427_v21 }
 0x114   :  { %v381_v23 = vpop.f32.mrb[0].mxu0 }
 0x115   :  { %v162_v24 = vadd.f32 %v381_v23, %v341_v22  ;;  %v156_v25 = vpop.f32.mrb[1].mxu0 }
 0x116   :  { %v157_v26 = vadd.f32 %v341_v22, %v156_v25 }
 0x117   :  { %v176_v29 = vmax.f32 %v162_v24, 0.0 }
 0x118   :  { %v175_v27 = vmax.f32 %v157_v26, 0.0  ;;  %v384_v28 = vpop.f32.mrb[2].mxu0 }
 0x119   :  { %v172_v30 = vadd.f32 %v384_v28, %v341_v22  ;;  %v166_v31 = vpop.f32.mrb[3].mxu0 }
 0x11a   :  { %v167_v32 = vadd.f32 %v341_v22, %v166_v31  ;;  %401 = vmatprep.mubr.msk.f32.mxu1 %vm194_vm1, %v175_v27 }
 0x11b   :  { %v178_v33 = vmax.f32 %v172_v30, 0.0  ;;  %402 = vmatmul.mubr.msk.f32.vlgmr.msra.gmra.mrb[0].mxu1 %vm194_vm1, %v176_v29 }
 0x11c   :  { %v177_v34 = vmax.f32 %v167_v32, 0.0 }
 0x11e   :  { %404 = vmatprep.mubr.msk.f32.mxu1 %vm194_vm1, %v177_v34 }
 0x11f   :  { %405 = vmatmul.mubr.msk.f32.gmra.mrb[2].mxu1 %vm194_vm1, %v178_v33 }
 0x1ee   :  { %v403_v36 = vpop.f32.mrb[0].mxu1 }
 0x1ef   :  { %v273_v37 = vpop.f32.mrb[1].mxu1  ;;  %v279_v41 = vadd.f32 %v403_v36, %v346_v35 }
 0x1f0   :  { %v274_v38 = vadd.f32 %v346_v35, %v273_v37 }
 0x1f2   :  { %292 = vxpose.xlu0.b32.start [1/4] (short) (narrow) %v274_v38, 8  ;;  %v406_v39 = vpop.f32.mrb[2].mxu1 }
 0x1f3   :  { %v283_v40 = vpop.f32.mrb[3].mxu1  ;;  %v289_v43 = vadd.f32 %v406_v39, %v346_v35 }
 0x1f4   :  { %v284_v42 = vadd.f32 %v346_v35, %v283_v40 }
 0x1f6   :  { %293 = vxpose.xlu0.b32.cont [2/4] (short) (narrow) %v279_v41, 8 }
 0x1fa   :  { %294 = vxpose.xlu0.b32.cont [3/4] (short) (narrow) %v284_v42, 8 }
 0x1fe   :  { %295 = vxpose.xlu0.b32.end [4/4] (short) (narrow) %v289_v43, 8 }
 0x272   :  { %v308_v44 = vpop.trf.xlu0 }
 0x273   :  { %324 = vst.msk [vmem:[#allocation8] sm:$0xff] %vm77_vm0, %v308_v44 }
 0x274   :  { %515 = shalt.err (!%p512_p0)
}
 0x275   :  { %s516_s10 = scalar_lea.hbm %s648_s5, 128 }
 0x276   :  { %p517_p1 = scmp.ne.s32.totalorder %s648_s5, %s516_s10  ;;  %p520_p2 = scmp.lt.u32.totalorder %s516_s10, %s648_s5 }
 0x278   :  { %p522_p3 = pnand %p520_p2, %p517_p1 }
 0x27a   :  { %525 = shalt.err (!%p522_p3)
}
 0x27b   :  { %334 = dma.vmem_to_hbm [thread:$0]  %s332_s7, 128, %s648_s5, [#allocation4]  }
 0x27c   :  { %530 = dma.done.wait [#allocation4], 128  }
 0x27d   :  { %531 = vsyncadd [#allocation4], 4294967168 }
 0x27e   :  { %338 = vsyncpa [#allocation3], 1 }
 0x27f   :  { %339 = vsyncpa [#allocation6], 1 }
 0x280   :  { %340 = vsyncpa [#allocation4], 1 }

</bundles_post_ra>
